<compile_context>
chip_gen: v7x
topology: tpu7x:2x2x1
jax: 0.10.0
libtpu: 0.0.40
codegen_flags: <defaults>
</compile_context>

<pallas_src>
import functools

import jax
import jax.numpy as jnp
from jax import lax
from jax.experimental import pallas as pl
from jax.experimental.pallas import tpu as pltpu


def _cdiv(a: int, b: int) -> int:
    return (a + b - 1) // b


def _round_up(x: int, m: int) -> int:
    return _cdiv(x, m) * m


def _iou_sums_kernel(
    yp_ref,
    yt_ref,
    inter_ref,
    union_ref,
    inter_acc,
    union_acc,
    *,
    hw: int,
    tile_hw: int,
    hw_tiles_per_split: int,
    mask_tail: bool,
):
    """One (tile_bc, tile_hw) streamed tile.

    Grid = (split, bc_tile, hw_tile-within-split); the HW (reduction) axis is
    LAST so the f32 VMEM accumulators follow the standard init/accumulate/
    finalize pattern.  Outputs are per-row partial sums for this split.
    """
    j = pl.program_id(2)
    nj = pl.num_programs(2)

    @pl.when(j == 0)
    def _init():
        inter_acc[...] = jnp.zeros_like(inter_acc)
        union_acc[...] = jnp.zeros_like(union_acc)

    # Cast on the VMEM tile only (HBM traffic stays in the input dtype).
    yp = yp_ref[...].astype(jnp.float32)
    yt = yt_ref[...].astype(jnp.float32)

    if mask_tail:
        # Mask columns beyond the true HW extent.  `t` is the UNclamped global
        # HW-tile index, so a duplicated (clamped) tail tile gets valid <= 0
        # and is fully zeroed.
        t = pl.program_id(0) * hw_tiles_per_split + j
        valid = hw - t * tile_hw
        col = lax.broadcasted_iota(jnp.int32, yp.shape, 1)
        keep = col < valid
        yp = jnp.where(keep, yp, 0.0)
        yt = jnp.where(keep, yt, 0.0)

    prod = yt * yp
    # (yt - yp)^2 + yt*yp == yt^2 + yp^2 - yt*yp  (one fewer multiply/elem)
    union_term = (yt - yp) * (yt - yp) + prod

    inter_acc[...] += jnp.sum(prod, axis=-1, keepdims=True)
    union_acc[...] += jnp.sum(union_term, axis=-1, keepdims=True)

    @pl.when(j == nj - 1)
    def _finalize():
        inter_ref[...] = inter_acc[...]
        union_ref[...] = union_acc[...]


def iou_loss(y_pred: jax.Array, y_true: jax.Array, epsilon: float = 1e-6) -> jax.Array:
    """IoU loss matching the PyTorch module's forward().

    y_pred, y_true: (..., H, W) — sums over the last two dims, means over the
    leading dims.  Returns a scalar float32.
    """
    assert y_pred.shape == y_true.shape
    if y_pred.dtype != y_true.dtype:
        ct = jnp.result_type(y_pred.dtype, y_true.dtype)
        y_pred = y_pred.astype(ct)
        y_true = y_true.astype(ct)

    *lead, h, w = y_pred.shape
    bc = 1
    for d in lead:
        bc *= d
    hw = h * w

    yp2 = y_pred.reshape(bc, hw)
    yt2 = y_true.reshape(bc, hw)

    # ---- tile sizing ------------------------------------------------------
    itemsize = yp2.dtype.itemsize
    # Keep the DMA chunk ~constant in BYTES across dtypes: 2048 lanes for f32,
    # 4096 for bf16.  2 inputs x 2 pipeline buffers x (256 x 2048 x 4B) = 8 MiB
    # -> fits every generation's default scoped-VMEM budget.
    max_tile_hw = (2048 * 4) // itemsize
    sub = {4: 8, 2: 16, 1: 32}.get(itemsize, 8)
    max_tile_bc = 256

    # HW (reduction) tiling, balanced against the true extent.
    if hw <= max_tile_hw:
        tile_hw = hw            # block == full dim -> always legal, no mask
        n_splits = 1
        n_hw_tiles = 1
    else:
        n_splits = 2            # leading "parallel" axis -> megacore can shard
        n_hw_tiles = _round_up(_cdiv(hw, max_tile_hw), n_splits)
        tile_hw = _round_up(_cdiv(hw, n_hw_tiles), 128)
    hw_tiles_per_split = n_hw_tiles // n_splits
    last_hw_block = _cdiv(hw, tile_hw) - 1          # last block with valid cols
    mask_tail = (n_hw_tiles * tile_hw) > hw

    # BC (row) tiling, balanced against the true extent.
    if bc <= max_tile_bc:
        tile_bc = bc            # block == full dim -> always legal
    else:
        tile_bc = _round_up(_cdiv(bc, _cdiv(bc, max_tile_bc)), sub)
    n_bc = _cdiv(bc, tile_bc)

    grid = (n_splits, n_bc, hw_tiles_per_split)

    def in_index(s, i, j):
        # Clamp so no block index ever points fully past the array; a clamped
        # duplicate tile is masked to zero in-kernel.
        return (i, jnp.minimum(s * hw_tiles_per_split + j, last_hw_block))

    def out_index(s, i, j):
        return (s, i, 0)

    kernel = functools.partial(
        _iou_sums_kernel,
        hw=hw,
        tile_hw=tile_hw,
        hw_tiles_per_split=hw_tiles_per_split,
        mask_tail=mask_tail,
    )

    inter_parts, union_parts = pl.pallas_call(
        kernel,
        out_shape=(
            jax.ShapeDtypeStruct((n_splits, bc, 1), jnp.float32),
            jax.ShapeDtypeStruct((n_splits, bc, 1), jnp.float32),
        ),
        grid=grid,
        in_specs=[
            pl.BlockSpec((tile_bc, tile_hw), in_index),
            pl.BlockSpec((tile_bc, tile_hw), in_index),
        ],
        out_specs=(
            pl.BlockSpec((None, tile_bc, 1), out_index),
            pl.BlockSpec((None, tile_bc, 1), out_index),
        ),
        scratch_shapes=[
            pltpu.VMEM((tile_bc, 1), jnp.float32),
            pltpu.VMEM((tile_bc, 1), jnp.float32),
        ],
        compiler_params=pltpu.CompilerParams(
            # split axis & BC rows are independent -> shardable across cores;
            # the HW reduction axis must stay "arbitrary" (accumulator).
            dimension_semantics=("parallel", "parallel", "arbitrary"),
        ),
    )(yp2, yt2)

    # Tiny O(B*C) finalize in JAX: combine the per-split partial sums, apply
    # epsilon / divide, and mean over the TRUE row count.
    inter = jnp.sum(inter_parts, axis=0)[:, 0]
    union = jnp.sum(union_parts, axis=0)[:, 0]
    iou = (inter + epsilon) / (union + epsilon)
    return (1.0 - jnp.mean(iou)).astype(jnp.float32)


def _iou_loss_ref(y_pred, y_true, epsilon=1e-6):
    # Pure-JAX reference mirroring the PyTorch forward.
    op_sum = lambda x: x.astype(jnp.float32).sum(-1).sum(-1)
    inter = op_sum(y_true * y_pred)
    union = op_sum(y_true ** 2) + op_sum(y_pred ** 2) - op_sum(y_true * y_pred)
    iou = (inter + epsilon) / (union + epsilon)
    return 1.0 - jnp.mean(iou)


if __name__ == "__main__":
    key = jax.random.PRNGKey(0)

    # --- check 1: module-sized shapes (single tile, no masking) ------------
    k1, k2, key = jax.random.split(key, 3)
    B, C, H, W = 2, 4, 16, 16
    y_pred = jax.nn.sigmoid(jax.random.normal(k1, (B, C, H, W), dtype=jnp.float32))
    y_true = (jax.random.uniform(k2, (B, C, H, W), dtype=jnp.float32) > 0.5).astype(
        jnp.float32
    )
    loss = jax.block_until_ready(iou_loss(y_pred, y_true))
    ref = jax.block_until_ready(_iou_loss_ref(y_pred, y_true))
    assert jnp.allclose(loss, ref, atol=1e-5, rtol=1e-5), (loss, ref)

    # --- check 2: HW 2-way split, balanced tiles, no padding (hw=3072) -----
    k1, k2, key = jax.random.split(key, 3)
    B, C, H, W = 2, 8, 32, 96  # hw=3072 -> two 1536-wide tiles, one per split
    y_pred = jax.nn.sigmoid(jax.random.normal(k1, (B, C, H, W), dtype=jnp.float32))
    y_true = (jax.random.uniform(k2, (B, C, H, W), dtype=jnp.float32) > 0.5).astype(
        jnp.float32
    )
    loss = jax.block_until_ready(iou_loss(y_pred, y_true))
    ref = jax.block_until_ready(_iou_loss_ref(y_pred, y_true))
    assert jnp.allclose(loss, ref, atol=1e-5, rtol=1e-5), (loss, ref)

    # --- check 3: bf16 inputs stream as bf16 (f32 accumulation) ------------
    k1, k2, key = jax.random.split(key, 3)
    B, C, H, W = 2, 4, 16, 16
    y_pred = jax.nn.sigmoid(
        jax.random.normal(k1, (B, C, H, W), dtype=jnp.float32)
    ).astype(jnp.bfloat16)
    y_true = (jax.random.uniform(k2, (B, C, H, W), dtype=jnp.float32) > 0.5).astype(
        jnp.bfloat16
    )
    loss = jax.block_until_ready(iou_loss(y_pred, y_true))
    ref = jax.block_until_ready(_iou_loss_ref(y_pred, y_true))
    assert jnp.allclose(loss, ref, atol=1e-4, rtol=1e-4), (loss, ref)

    # --- check 4: in-kernel tail masking (hw=2380 not tile-aligned, bc=15) -
    k1, k2, _ = jax.random.split(key, 3)
    B, C, H, W = 3, 5, 34, 70  # hw=2380 -> 2 x 1280-wide tiles, tail masked
    y_pred = jax.nn.sigmoid(jax.random.normal(k1, (B, C, H, W), dtype=jnp.float32))
    y_true = (jax.random.uniform(k2, (B, C, H, W), dtype=jnp.float32) > 0.5).astype(
        jnp.float32
    )
    loss = jax.block_until_ready(iou_loss(y_pred, y_true))
    ref = jax.block_until_ready(_iou_loss_ref(y_pred, y_true))
    assert jnp.allclose(loss, ref, atol=1e-5, rtol=1e-5), (loss, ref)

    print("KERNEL_OK")
</pallas_src>

<mosaic_0001>
module attributes {stable_mosaic.version = 11 : i64} {
  func.func @_iou_sums_kernel(%arg0: i32, %arg1: i32, %arg2: i32, %arg3: memref<8x256xf32, #tpu.memory_space<vmem>>, %arg4: memref<8x256xf32, #tpu.memory_space<vmem>>, %arg5: memref<1x8x1xf32, #tpu.memory_space<vmem>>, %arg6: memref<1x8x1xf32, #tpu.memory_space<vmem>>, %arg7: memref<8x1xf32, #tpu.memory_space<vmem>>, %arg8: memref<8x1xf32, #tpu.memory_space<vmem>>) attributes {dimension_semantics = [#tpu.dimension_semantics<parallel>, #tpu.dimension_semantics<parallel>, #tpu.dimension_semantics<arbitrary>], iteration_bounds = array<i64: 1, 1, 1>, scalar_prefetch = 0 : i64, scratch_operands = 2 : i64, tpu.core_type = #tpu.core_type<tc>, window_params = [{transform_indices = @transform_0, window_bounds = array<i64: 8, 256>}, {transform_indices = @transform_1, window_bounds = array<i64: 8, 256>}, {transform_indices = @transform_2, window_bounds = array<i64: 1, 8, 1>}, {transform_indices = @transform_3, window_bounds = array<i64: 1, 8, 1>}]} {
    %c0_i32 = arith.constant 0 : i32
    %0 = arith.cmpi eq, %arg2, %c0_i32 : i32
    %1 = arith.extui %0 : i1 to i32
    %c0_i32_0 = arith.constant 0 : i32
    %2 = arith.cmpi ne, %1, %c0_i32_0 : i32
    scf.if %2 {
      %cst_15 = arith.constant 0.000000e+00 : f32
      %23 = vector.broadcast %cst_15 : f32 to vector<8x1xf32>
      %c0_16 = arith.constant 0 : index
      %c0_17 = arith.constant 0 : index
      %24 = vector.load %arg7[%c0_16, %c0_17] : memref<8x1xf32, #tpu.memory_space<vmem>>, vector<8x1xf32>
      tpu.vector_store %arg7[%c0_16, %c0_17], %23 {strides = array<i32>} : memref<8x1xf32, #tpu.memory_space<vmem>>, vector<8x1xf32>,
      %cst_18 = arith.constant 0.000000e+00 : f32
      %25 = vector.broadcast %cst_18 : f32 to vector<8x1xf32>
      %c0_19 = arith.constant 0 : index
      %c0_20 = arith.constant 0 : index
      %26 = vector.load %arg8[%c0_19, %c0_20] : memref<8x1xf32, #tpu.memory_space<vmem>>, vector<8x1xf32>
      tpu.vector_store %arg8[%c0_19, %c0_20], %25 {strides = array<i32>} : memref<8x1xf32, #tpu.memory_space<vmem>>, vector<8x1xf32>,
    } else {
    }
    %c0 = arith.constant 0 : index
    %c0_1 = arith.constant 0 : index
    %3 = vector.load %arg3[%c0, %c0_1] : memref<8x256xf32, #tpu.memory_space<vmem>>, vector<8x256xf32>
    %c0_2 = arith.constant 0 : index
    %c0_3 = arith.constant 0 : index
    %4 = vector.load %arg4[%c0_2, %c0_3] : memref<8x256xf32, #tpu.memory_space<vmem>>, vector<8x256xf32>
    %5 = arith.mulf %4, %3 : vector<8x256xf32>
    %6 = arith.subf %4, %3 : vector<8x256xf32>
    %7 = arith.subf %4, %3 : vector<8x256xf32>
    %8 = arith.mulf %6, %7 : vector<8x256xf32>
    %9 = arith.addf %8, %5 : vector<8x256xf32>
    %c0_4 = arith.constant 0 : index
    %c0_5 = arith.constant 0 : index
    %10 = vector.load %arg7[%c0_4, %c0_5] : memref<8x1xf32, #tpu.memory_space<vmem>>, vector<8x1xf32>
    %cst = arith.constant dense<0.000000e+00> : vector<8xf32>
    %11 = vector.multi_reduction <add>, %5, %cst [1] : vector<8x256xf32> to vector<8xf32>
    %12 = vector.shape_cast %11 : vector<8xf32> to vector<8x1xf32>
    %13 = arith.addf %10, %12 : vector<8x1xf32>
    %c0_6 = arith.constant 0 : index
    %c0_7 = arith.constant 0 : index
    %14 = vector.load %arg7[%c0_6, %c0_7] : memref<8x1xf32, #tpu.memory_space<vmem>>, vector<8x1xf32>
    tpu.vector_store %arg7[%c0_6, %c0_7], %13 {strides = array<i32>} : memref<8x1xf32, #tpu.memory_space<vmem>>, vector<8x1xf32>,
    %c0_8 = arith.constant 0 : index
    %c0_9 = arith.constant 0 : index
    %15 = vector.load %arg8[%c0_8, %c0_9] : memref<8x1xf32, #tpu.memory_space<vmem>>, vector<8x1xf32>
    %cst_10 = arith.constant dense<0.000000e+00> : vector<8xf32>
    %16 = vector.multi_reduction <add>, %9, %cst_10 [1] : vector<8x256xf32> to vector<8xf32>
    %17 = vector.shape_cast %16 : vector<8xf32> to vector<8x1xf32>
    %18 = arith.addf %15, %17 : vector<8x1xf32>
    %c0_11 = arith.constant 0 : index
    %c0_12 = arith.constant 0 : index
    %19 = vector.load %arg8[%c0_11, %c0_12] : memref<8x1xf32, #tpu.memory_space<vmem>>, vector<8x1xf32>
    tpu.vector_store %arg8[%c0_11, %c0_12], %18 {strides = array<i32>} : memref<8x1xf32, #tpu.memory_space<vmem>>, vector<8x1xf32>,
    %c0_i32_13 = arith.constant 0 : i32
    %20 = arith.cmpi eq, %arg2, %c0_i32_13 : i32
    %21 = arith.extui %20 : i1 to i32
    %c0_i32_14 = arith.constant 0 : i32
    %22 = arith.cmpi ne, %21, %c0_i32_14 : i32
    scf.if %22 {
      %c0_15 = arith.constant 0 : index
      %c0_16 = arith.constant 0 : index
      %23 = vector.load %arg7[%c0_15, %c0_16] : memref<8x1xf32, #tpu.memory_space<vmem>>, vector<8x1xf32>
      %c0_17 = arith.constant 0 : index
      %c0_18 = arith.constant 0 : index
      %c0_19 = arith.constant 0 : index
      %24 = vector.load %arg5[%c0_17, %c0_18, %c0_19] : memref<1x8x1xf32, #tpu.memory_space<vmem>>, vector<1x8x1xf32>
      %25 = vector.shape_cast %24 : vector<1x8x1xf32> to vector<8x1xf32>
      %26 = vector.shape_cast %23 : vector<8x1xf32> to vector<1x8x1xf32>
      tpu.vector_store %arg5[%c0_17, %c0_18, %c0_19], %26 {strides = array<i32>} : memref<1x8x1xf32, #tpu.memory_space<vmem>>, vector<1x8x1xf32>,
      %c0_20 = arith.constant 0 : index
      %c0_21 = arith.constant 0 : index
      %27 = vector.load %arg8[%c0_20, %c0_21] : memref<8x1xf32, #tpu.memory_space<vmem>>, vector<8x1xf32>
      %c0_22 = arith.constant 0 : index
      %c0_23 = arith.constant 0 : index
      %c0_24 = arith.constant 0 : index
      %28 = vector.load %arg6[%c0_22, %c0_23, %c0_24] : memref<1x8x1xf32, #tpu.memory_space<vmem>>, vector<1x8x1xf32>
      %29 = vector.shape_cast %28 : vector<1x8x1xf32> to vector<8x1xf32>
      %30 = vector.shape_cast %27 : vector<8x1xf32> to vector<1x8x1xf32>
      tpu.vector_store %arg6[%c0_22, %c0_23, %c0_24], %30 {strides = array<i32>} : memref<1x8x1xf32, #tpu.memory_space<vmem>>, vector<1x8x1xf32>,
    } else {
    }
    return
  }
  func.func @transform_0(%arg0: i32, %arg1: i32, %arg2: i32) -> (i32, i32) {
    %c1_i32 = arith.constant 1 : i32
    %0 = arith.muli %arg0, %c1_i32 : i32
    %1 = arith.addi %0, %arg2 : i32
    %c0_i32 = arith.constant 0 : i32
    %2 = arith.minsi %1, %c0_i32 : i32
    %c0_i32_0 = arith.constant 0 : i32
    return %arg1, %2 : i32, i32
  }
  func.func @transform_1(%arg0: i32, %arg1: i32, %arg2: i32) -> (i32, i32) {
    %c1_i32 = arith.constant 1 : i32
    %0 = arith.muli %arg0, %c1_i32 : i32
    %1 = arith.addi %0, %arg2 : i32
    %c0_i32 = arith.constant 0 : i32
    %2 = arith.minsi %1, %c0_i32 : i32
    %c0_i32_0 = arith.constant 0 : i32
    return %arg1, %2 : i32, i32
  }
  func.func @transform_2(%arg0: i32, %arg1: i32, %arg2: i32) -> (i32, i32, i32) {
    %c0_i32 = arith.constant 0 : i32
    %c0_i32_0 = arith.constant 0 : i32
    return %arg0, %arg1, %c0_i32 : i32, i32, i32
  }
  func.func @transform_3(%arg0: i32, %arg1: i32, %arg2: i32) -> (i32, i32, i32) {
    %c0_i32 = arith.constant 0 : i32
    %c0_i32_0 = arith.constant 0 : i32
    return %arg0, %arg1, %c0_i32 : i32, i32, i32
  }
}

</mosaic_0001>

<bundles_post_ra>
// kernel: tpu_custom_call.1
= control target key start
LH: loop header
LB: loop body
LE: loop exit
PB: predicated region body
PF: predicated region fallthrough
CT: control target
= control target key end

     0   :  { %9 = vsyncpa [#allocation5], 0  ;;  %s220_s0 = inlined_call_operand.hbm [shape: f32[8,256], index: 0, kind: input, shape index: {}]   ;;  %s221_s1 = inlined_call_operand.hbm [shape: f32[8,256], index: 1, kind: input, shape index: {}]   ;;  %s222_s2 = inlined_call_operand.vmem [shape: f32[1,8,1], index: 2, kind: output, shape index: {0}]   ;;  %s223_s3 = inlined_call_operand.vmem [shape: f32[1,8,1], index: 3, kind: output, shape index: {1}]  }
   0x1   :  { %10 = vsyncpa [#allocation7], 0  ;;  %s161_s12 = smov [#allocation4]   ;;  %s162_s14 = smov [#allocation6]  }
   0x2   :  { %s23_s13 = sshll.u32 %s161_s12, 4  ;;  %s39_s15 = sshll.u32 %s162_s14, 4  ;;  %s24_s13 = int_to_ptr.vmem [resolvable:$true] %s23_s13  ;;  %s40_s15 = int_to_ptr.vmem [resolvable:$true] %s39_s15 }
   0x3   :  { %s113_s18 = scalar_lea.hbm %s220_s0, 256 }
   0x4   :  { %p114_p0 = scmp.ne.s32.totalorder %s220_s0, %s113_s18  ;;  %p117_p1 = scmp.lt.u32.totalorder %s113_s18, %s220_s0 }
   0x6   :  { %p119_p2 = pnand %p117_p1, %p114_p0 }
   0x8   :  { %122 = shalt.err (!%p119_p2)
}
   0x9   :  { %s123_s23 = scalar_lea.vmem %s24_s13, 256  ;;  %p128_p4 = scmp.lt.s32.totalorder %s24_s13, %s24_s13 }
   0xa   :  { %p124_p3 = scmp.ne.s32.totalorder %s24_s13, %s123_s23  ;;  %p129_p5 = scmp.lt.s32.totalorder %s123_s23, %s123_s23 }
   0xc   :  { %p130_p6 = por %p129_p5, %p128_p4 }
   0xe   :  { %p131_p7 = pnand %p130_p6, %p124_p3 }
  0x10   :  { %134 = shalt.err (!%p131_p7)
}
  0x11   :  { %26 = dma.hbm_to_vmem [thread:$0]  %s220_s0, 256, %s24_s13, [#allocation5]  }
  0x12   :  { %s135_s28 = scalar_lea.hbm %s221_s1, 256 }
  0x13   :  { %p136_p8 = scmp.ne.s32.totalorder %s221_s1, %s135_s28  ;;  %p139_p9 = scmp.lt.u32.totalorder %s135_s28, %s221_s1 }
  0x15   :  { %p141_p10 = pnand %p139_p9, %p136_p8 }
  0x17   :  { %144 = shalt.err (!%p141_p10)
}
  0x18   :  { %s145_s6 = scalar_lea.vmem %s40_s15, 256  ;;  %p150_p12 = scmp.lt.s32.totalorder %s40_s15, %s40_s15 }
  0x19   :  { %p146_p11 = scmp.ne.s32.totalorder %s40_s15, %s145_s6  ;;  %p151_p13 = scmp.lt.s32.totalorder %s145_s6, %s145_s6 }
  0x1b   :  { %p152_p0 = por %p151_p13, %p150_p12 }
  0x1d   :  { %p153_p1 = pnand %p152_p0, %p146_p11 }
  0x1f   :  { %156 = shalt.err (!%p153_p1)
}
  0x20   :  { %42 = dma.hbm_to_vmem [thread:$0]  %s221_s1, 256, %s40_s15, [#allocation7]  }
  0x21   :  { %157 = dma.done.wait [#allocation5], 256  }
  0x22   :  { %158 = vsyncadd [#allocation5], 4294967040 }
  0x23   :  { %159 = dma.done.wait [#allocation7], 256  }
  0x24   :  { %160 = vsyncadd [#allocation7], 4294967040  ;;  %vm61_vm0 = vcmask 7168   ;;  %v163_v0 = vmov 0.0   ;;  %v64_v1 = vld [vmem:[#allocation4] sm:$0xff]  ;;  %v65_v2 = vld [vmem:[#allocation4 + $0x8] sm:$0xff] }
  0x25   :  { %62 = vst.msk [vmem:[#allocation2] sm:$0xff] %vm61_vm0, %v163_v0  ;;  %63 = vst.msk [vmem:[#allocation3] sm:$0xff] %vm61_vm0, %v163_v0  ;;  %v66_v3 = vld [vmem:[#allocation6] sm:$0xff]  ;;  %v67_v4 = vld [vmem:[#allocation6 + $0x8] sm:$0xff] }
  0x26   :  { %v68_v5 = vmul.f32 %v66_v3, %v64_v1  ;;  %v70_v6 = vsub.f32 %v66_v3, %v64_v1  ;;  %v69_v7 = vmul.f32 %v67_v4, %v65_v2  ;;  %v71_v8 = vsub.f32 %v67_v4, %v65_v2 }
  0x28   :  { %v72_v9 = vmul.f32 %v70_v6, %v70_v6  ;;  %v73_v10 = vmul.f32 %v71_v8, %v71_v8  ;;  %v77_v11 = vadd.f32 %v69_v7, %v68_v5 }
  0x2a   :  { %v74_v12 = vadd.f32 %v72_v9, %v68_v5  ;;  %78 = vadd.xlane.f32.xlu0 %v77_v11  ;;  %v75_v13 = vadd.f32 %v73_v10, %v69_v7 }
  0x2c   :  { %v84_v14 = vadd.f32 %v75_v13, %v74_v12  ;;  %v76_v15 = vld [vmem:[#allocation2] sm:$0xff]  ;;  %v83_v18 = vld [vmem:[#allocation3] sm:$0xff] }
  0x2e   :  { %85 = vadd.xlane.f32.xlu0 %v84_v14 }
  0xb7   :  { %v79_v16 = vpop.xlane.xlu0 %78 }
  0xb8   :  { %v80_v17 = vadd.f32 %v79_v16, %v76_v15 }
  0xba   :  { %82 = vst.msk [vmem:[#allocation2] sm:$0xff] %vm61_vm0, %v80_v17 }
  0xbb   :  { %v86_v19 = vpop.xlane.xlu0 %85 }
  0xbc   :  { %v87_v20 = vadd.f32 %v86_v19, %v83_v18 }
  0xbe   :  { %88 = vst.msk [vmem:[#allocation3] sm:$0xff] %vm61_vm0, %v87_v20 }
  0xc1   :  { %v92_v21 = vld [vmem:[#allocation2] sm:$0xff] }
  0xc2   :  { %93 = vst.msk [vmem:[%s222_s2] sm:$0xff] %vm61_vm0, %v92_v21 }
  0xc5   :  { %v94_v22 = vld [vmem:[#allocation3] sm:$0xff] }
  0xc6   :  { %95 = vst.msk [vmem:[%s223_s3] sm:$0xff] %vm61_vm0, %v94_v22 }
  0xc7   :  { %104 = vsyncpa [#allocation5], 1 }
  0xc8   :  { %105 = vsyncpa [#allocation7], 1 }

</bundles_post_ra>
